<compile_context>
chip_gen: v7x
topology: tpu7x:2x2x1
jax: 0.10.0
libtpu: 0.0.40
codegen_flags: <defaults>
</compile_context>

<pallas_src>
import functools

import jax
import jax.numpy as jnp
from jax.experimental import pallas as pl
from jax.experimental.pallas import tpu as pltpu


# --------------------------------------------------------------------------
# Kernels
# --------------------------------------------------------------------------
def _residual_layernorm_f32(y, res, g, beta, eps):
    """y, res: [TM, H] f32; g, beta: [1, H] f32 -> LayerNorm(y + res) * g + beta."""
    y = y + res
    mean = jnp.mean(y, axis=-1, keepdims=True)
    c = y - mean
    var = jnp.mean(c * c, axis=-1, keepdims=True)
    inv = jax.lax.rsqrt(var + eps)          # EUP rsqrt -> separate bundle slot
    return c * inv * g + beta


def _matmul_bias_f32(x, w, b):
    """x: [TM, H_in], w: [H_out, H_in] (torch layout) -> x @ w^T + b in f32.

    Contract dim 1 of BOTH operands so the wrapper never materializes w.T.
    preferred_element_type=f32 keeps the MXU accumulate in f32 even for bf16
    operands (the fast native-bf16 MXU path on v5e/v6e/v7x).
    """
    return jax.lax.dot_general(
        x, w,
        dimension_numbers=(((1,), (1,)), ((), ())),
        preferred_element_type=jnp.float32) + b


def _bso_kernel(x_ref, res_ref, w_ref, b_ref, g_ref, beta_ref, o_ref, *, eps):
    y = _matmul_bias_f32(x_ref[...], w_ref[...], b_ref[...])
    out = _residual_layernorm_f32(y, res_ref[...].astype(jnp.float32),
                                  g_ref[...], beta_ref[...], eps)
    o_ref[...] = out.astype(o_ref.dtype)


def _bso_dropout_kernel(x_ref, res_ref, mask_ref, w_ref, b_ref, g_ref, beta_ref,
                        o_ref, *, eps, scale):
    y = _matmul_bias_f32(x_ref[...], w_ref[...], b_ref[...])
    # Dropout on the dense output (matching torch: dropout before residual add).
    # mask holds {0, 1}; survivors rescaled by 1/(1-p) in f32.
    y = y * (mask_ref[...].astype(jnp.float32) * scale)
    out = _residual_layernorm_f32(y, res_ref[...].astype(jnp.float32),
                                  g_ref[...], beta_ref[...], eps)
    o_ref[...] = out.astype(o_ref.dtype)


# --------------------------------------------------------------------------
# Tiling / VMEM sizing (single footprint formula, generation-aware)
# --------------------------------------------------------------------------
def _round_up(x, m):
    return ((x + m - 1) // m) * m


def _vmem_capacity_bytes():
    try:
        if jax.devices()[0].platform == "tpu":
            return int(pltpu.get_tpu_info().vmem_capacity_bytes)
    except Exception:
        pass
    return 64 << 20  # conservative: v7x per-TensorCore VMEM


def _vmem_footprint_bytes(bm, hidden, act_bytes, w_bytes, with_mask):
    # Row-tiled operands (x, res, out, [mask]) are double-buffered by BlockSpec.
    n_row_ops = 4 if with_mask else 3
    row = 2 * n_row_ops * bm * hidden * act_bytes
    # Weight has a constant index_map (DMA'd once) but is still allocated with
    # two buffers; budget it conservatively.
    weight = 2 * hidden * hidden * w_bytes
    vecs = 2 * 3 * 8 * 128 * 4               # bias / gamma / beta padded tiles
    return row + weight + vecs


def _pick_block_m(n_rows, hidden, act_bytes, w_bytes, with_mask, budget):
    """Largest row tile fitting the VMEM budget; keeps >= 2 grid steps when
    possible so v7x's two TensorCores both get work; avoids huge padding."""
    max_bm = max(16, _round_up(n_rows, 16))
    for bm in (1024, 512, 256, 128, 64, 32, 16):
        if bm > max_bm:
            continue
        if n_rows > 16 and bm >= n_rows:
            continue  # would collapse the grid to a single step
        if _vmem_footprint_bytes(bm, hidden, act_bytes, w_bytes,
                                 with_mask) <= budget:
            return bm
    # TODO(synk): for very large hidden_size the [H, H] weight itself exceeds
    # VMEM and would need K/N tiling; BERT-scale hidden sizes fit comfortably.
    return 16


# --------------------------------------------------------------------------
# Wrapper
# --------------------------------------------------------------------------
def bert_self_output_pallas(hidden_states, input_tensor, dense_weight,
                            dense_bias, ln_weight, ln_bias, *, eps=1e-5,
                            dropout_rate=0.0, dropout_rng=None,
                            dropout_mask=None):
    """BertSelfOutput forward.

    dropout_rate == 0.0 -> eval mode (deterministic).
    Training mode: pass dropout_rate > 0 and either a jax.random key
    (dropout_rng) or an explicit 0/1 keep mask (dropout_mask, same shape as
    hidden_states).  eps default 1e-5 matches torch.nn.LayerNorm's default,
    which is what the reference module uses.
    """
    orig_shape = hidden_states.shape
    hidden = orig_shape[-1]

    # Pass activations through in their original dtype (no up-casts, no .T):
    # reshapes are metadata-only.
    x = hidden_states.reshape(-1, hidden)
    res = input_tensor.reshape(-1, hidden)
    n_rows = x.shape[0]

    w = dense_weight if dense_weight.dtype == x.dtype else dense_weight.astype(x.dtype)
    b = dense_bias.astype(jnp.float32).reshape(1, hidden)
    g = ln_weight.astype(jnp.float32).reshape(1, hidden)
    beta = ln_bias.astype(jnp.float32).reshape(1, hidden)

    use_dropout = float(dropout_rate) > 0.0

    capacity = _vmem_capacity_bytes()
    budget = (capacity * 6) // 10                 # target ~60% of VMEM
    act_bytes = x.dtype.itemsize
    w_bytes = w.dtype.itemsize
    bm = _pick_block_m(n_rows, hidden, act_bytes, w_bytes, use_dropout, budget)

    padded_rows = _round_up(n_rows, bm)
    grid = (padded_rows // bm,)

    footprint = _vmem_footprint_bytes(bm, hidden, act_bytes, w_bytes, use_dropout)
    vmem_limit = int(min((capacity * 9) // 10, max(2 * footprint, 32 << 20)))

    if padded_rows != n_rows:
        pad = padded_rows - n_rows
        x = jnp.pad(x, ((0, pad), (0, 0)))
        res = jnp.pad(res, ((0, pad), (0, 0)))

    row_spec = pl.BlockSpec((bm, hidden), lambda i: (i, 0))
    w_spec = pl.BlockSpec((hidden, hidden), lambda i: (0, 0))
    vec_spec = pl.BlockSpec((1, hidden), lambda i: (0, 0))

    common = dict(
        out_shape=jax.ShapeDtypeStruct((padded_rows, hidden),
                                       hidden_states.dtype),
        out_specs=row_spec,
        grid=grid,
        compiler_params=pltpu.CompilerParams(
            dimension_semantics=("parallel",),
            vmem_limit_bytes=vmem_limit),
    )

    if use_dropout:
        rate = float(dropout_rate)
        # TODO(synk): an in-kernel pltpu.prng_random_bits mask would avoid this
        # extra DMA'd operand, but the stateful TPU PRNG has no interpret/CPU
        # lowering, so the keep-mask is generated here and streamed in.
        if dropout_mask is None:
            if dropout_rng is None:
                dropout_rng = jax.random.PRNGKey(0)
            keep = jax.random.bernoulli(dropout_rng, 1.0 - rate,
                                        (padded_rows, hidden))
        else:
            keep = dropout_mask.reshape(-1, hidden)
            if keep.shape[0] != padded_rows:
                keep = jnp.pad(keep,
                               ((0, padded_rows - keep.shape[0]), (0, 0)))
        mask = keep.astype(x.dtype)
        out = pl.pallas_call(
            functools.partial(_bso_dropout_kernel, eps=float(eps),
                              scale=1.0 / (1.0 - rate)),
            in_specs=[row_spec, row_spec, row_spec, w_spec,
                      vec_spec, vec_spec, vec_spec],
            **common,
        )(x, res, mask, w, b, g, beta)
    else:
        out = pl.pallas_call(
            functools.partial(_bso_kernel, eps=float(eps)),
            in_specs=[row_spec, row_spec, w_spec,
                      vec_spec, vec_spec, vec_spec],
            **common,
        )(x, res, w, b, g, beta)

    if padded_rows != n_rows:
        out = out[:n_rows]
    return out.reshape(orig_shape)


# --------------------------------------------------------------------------
# Pure-JAX reference (mirrors the PyTorch forward)
# --------------------------------------------------------------------------
def bert_self_output_ref(hidden_states, input_tensor, dense_weight, dense_bias,
                         ln_weight, ln_bias, eps=1e-5, dropout_mask=None,
                         dropout_rate=0.0):
    y = jnp.dot(hidden_states.astype(jnp.float32),
                dense_weight.astype(jnp.float32).T,
                precision=jax.lax.Precision.HIGHEST) + dense_bias
    if dropout_mask is not None:
        y = y * dropout_mask.astype(jnp.float32) / (1.0 - dropout_rate)
    y = y + input_tensor.astype(jnp.float32)
    mean = jnp.mean(y, axis=-1, keepdims=True)
    var = jnp.mean((y - mean) ** 2, axis=-1, keepdims=True)
    return (y - mean) / jnp.sqrt(var + eps) * ln_weight + ln_bias


if __name__ == "__main__":
    key = jax.random.PRNGKey(0)
    B, S, H = 2, 128, 128                       # batch, seq, hidden_size
    ks = jax.random.split(key, 7)
    hidden_states = jax.random.normal(ks[0], (B, S, H), dtype=jnp.float32)
    input_tensor = jax.random.normal(ks[1], (B, S, H), dtype=jnp.float32)
    dense_weight = 0.05 * jax.random.normal(ks[2], (H, H), dtype=jnp.float32)
    dense_bias = 0.05 * jax.random.normal(ks[3], (H,), dtype=jnp.float32)
    ln_weight = 1.0 + 0.1 * jax.random.normal(ks[4], (H,), dtype=jnp.float32)
    ln_bias = 0.1 * jax.random.normal(ks[5], (H,), dtype=jnp.float32)

    ref = bert_self_output_ref(hidden_states, input_tensor, dense_weight,
                               dense_bias, ln_weight, ln_bias)

    # 1) Eval mode, f32 activations — elementwise check vs reference.
    out = bert_self_output_pallas(hidden_states, input_tensor, dense_weight,
                                  dense_bias, ln_weight, ln_bias)
    jax.block_until_ready(out)
    assert out.shape == ref.shape
    err = float(jnp.max(jnp.abs(out - ref)))
    assert err < 5e-3, f"f32 eval mismatch: {err}"

    # 2) Eval mode, bf16 activations/weight (native bf16 MXU path, bf16 DMA).
    out_bf16 = bert_self_output_pallas(
        hidden_states.astype(jnp.bfloat16), input_tensor.astype(jnp.bfloat16),
        dense_weight.astype(jnp.bfloat16), dense_bias, ln_weight, ln_bias)
    jax.block_until_ready(out_bf16)
    assert out_bf16.dtype == jnp.bfloat16
    err_bf16 = float(jnp.max(jnp.abs(out_bf16.astype(jnp.float32) - ref)))
    assert err_bf16 < 1.5e-1, f"bf16 eval mismatch: {err_bf16}"

    # 3) Training mode (dropout): explicit keep-mask so it can be checked
    #    elementwise against the reference.
    keep_mask = jax.random.bernoulli(ks[6], 0.9, (B, S, H))
    out_do = bert_self_output_pallas(hidden_states, input_tensor, dense_weight,
                                     dense_bias, ln_weight, ln_bias,
                                     dropout_rate=0.1, dropout_mask=keep_mask)
    jax.block_until_ready(out_do)
    ref_do = bert_self_output_ref(hidden_states, input_tensor, dense_weight,
                                  dense_bias, ln_weight, ln_bias,
                                  dropout_mask=keep_mask, dropout_rate=0.1)
    assert out_do.shape == hidden_states.shape
    err_do = float(jnp.max(jnp.abs(out_do - ref_do)))
    assert err_do < 5e-3, f"dropout mismatch: {err_do}"

    print("KERNEL_OK")
</pallas_src>

<mosaic_0001>
module attributes {stable_mosaic.version = 11 : i64} {
  func.func @_bso_kernel(%arg0: i32, %arg1: memref<128x128xf32, #tpu.memory_space<vmem>>, %arg2: memref<128x128xf32, #tpu.memory_space<vmem>>, %arg3: memref<128x128xf32, #tpu.memory_space<vmem>>, %arg4: memref<1x128xf32, #tpu.memory_space<vmem>>, %arg5: memref<1x128xf32, #tpu.memory_space<vmem>>, %arg6: memref<1x128xf32, #tpu.memory_space<vmem>>, %arg7: memref<128x128xf32, #tpu.memory_space<vmem>>) attributes {dimension_semantics = [#tpu.dimension_semantics<parallel>], iteration_bounds = array<i64: 2>, scalar_prefetch = 0 : i64, scratch_operands = 0 : i64, tpu.core_type = #tpu.core_type<tc>, window_params = [{transform_indices = @transform_0, window_bounds = array<i64: 128, 128>}, {transform_indices = @transform_1, window_bounds = array<i64: 128, 128>}, {pipeline_mode = #tpu.pipeline_mode<synchronous>, transform_indices = @transform_2, window_bounds = array<i64: 128, 128>}, {pipeline_mode = #tpu.pipeline_mode<synchronous>, transform_indices = @transform_3, window_bounds = array<i64: 1, 128>}, {pipeline_mode = #tpu.pipeline_mode<synchronous>, transform_indices = @transform_4, window_bounds = array<i64: 1, 128>}, {pipeline_mode = #tpu.pipeline_mode<synchronous>, transform_indices = @transform_5, window_bounds = array<i64: 1, 128>}, {transform_indices = @transform_6, window_bounds = array<i64: 128, 128>}]} {
    %c0 = arith.constant 0 : index
    %c0_0 = arith.constant 0 : index
    %0 = vector.load %arg1[%c0, %c0_0] : memref<128x128xf32, #tpu.memory_space<vmem>>, vector<128x128xf32>
    %c0_1 = arith.constant 0 : index
    %c0_2 = arith.constant 0 : index
    %1 = vector.load %arg3[%c0_1, %c0_2] : memref<128x128xf32, #tpu.memory_space<vmem>>, vector<128x128xf32>
    %c0_3 = arith.constant 0 : index
    %c0_4 = arith.constant 0 : index
    %2 = vector.load %arg4[%c0_3, %c0_4] : memref<1x128xf32, #tpu.memory_space<vmem>>, vector<1x128xf32>
    %cst = arith.constant dense<0.000000e+00> : vector<128x128xf32>
    %3 = tpu.matmul %0, %1, %cst {dimension_numbers = #tpu.dot_dimension_numbers<[1], [1], [0], [0], [0, 0, 1, 0], [], []>} : vector<128x128xf32>, vector<128x128xf32>, vector<128x128xf32> -> vector<128x128xf32>
    %4 = vector.broadcast %2 : vector<1x128xf32> to vector<128x128xf32>
    %5 = arith.addf %3, %4 : vector<128x128xf32>
    %c0_5 = arith.constant 0 : index
    %c0_6 = arith.constant 0 : index
    %6 = vector.load %arg2[%c0_5, %c0_6] : memref<128x128xf32, #tpu.memory_space<vmem>>, vector<128x128xf32>
    %c0_7 = arith.constant 0 : index
    %c0_8 = arith.constant 0 : index
    %7 = vector.load %arg5[%c0_7, %c0_8] : memref<1x128xf32, #tpu.memory_space<vmem>>, vector<1x128xf32>
    %c0_9 = arith.constant 0 : index
    %c0_10 = arith.constant 0 : index
    %8 = vector.load %arg6[%c0_9, %c0_10] : memref<1x128xf32, #tpu.memory_space<vmem>>, vector<1x128xf32>
    %9 = arith.addf %5, %6 : vector<128x128xf32>
    %cst_11 = arith.constant dense<0.000000e+00> : vector<128xf32>
    %10 = vector.multi_reduction <add>, %9, %cst_11 [1] : vector<128x128xf32> to vector<128xf32>
    %11 = vector.shape_cast %10 : vector<128xf32> to vector<128x1xf32>
    %cst_12 = arith.constant 1.280000e+02 : f32
    %12 = vector.broadcast %cst_12 : f32 to vector<128x1xf32>
    %13 = arith.divf %11, %12 : vector<128x1xf32>
    %14 = vector.broadcast %13 : vector<128x1xf32> to vector<128x128xf32>
    %15 = arith.subf %9, %14 : vector<128x128xf32>
    %16 = arith.mulf %15, %15 : vector<128x128xf32>
    %cst_13 = arith.constant dense<0.000000e+00> : vector<128xf32>
    %17 = vector.multi_reduction <add>, %16, %cst_13 [1] : vector<128x128xf32> to vector<128xf32>
    %18 = vector.shape_cast %17 : vector<128xf32> to vector<128x1xf32>
    %cst_14 = arith.constant 1.280000e+02 : f32
    %19 = vector.broadcast %cst_14 : f32 to vector<128x1xf32>
    %20 = arith.divf %18, %19 : vector<128x1xf32>
    %cst_15 = arith.constant 9.99999974E-6 : f32
    %21 = vector.broadcast %cst_15 : f32 to vector<128x1xf32>
    %22 = arith.addf %20, %21 : vector<128x1xf32>
    %23 = math.rsqrt %22 : vector<128x1xf32>
    %24 = vector.broadcast %23 : vector<128x1xf32> to vector<128x128xf32>
    %25 = arith.mulf %15, %24 : vector<128x128xf32>
    %26 = vector.broadcast %7 : vector<1x128xf32> to vector<128x128xf32>
    %27 = arith.mulf %25, %26 : vector<128x128xf32>
    %28 = vector.broadcast %8 : vector<1x128xf32> to vector<128x128xf32>
    %29 = arith.addf %27, %28 : vector<128x128xf32>
    %c0_16 = arith.constant 0 : index
    %c0_17 = arith.constant 0 : index
    %30 = vector.load %arg7[%c0_16, %c0_17] : memref<128x128xf32, #tpu.memory_space<vmem>>, vector<128x128xf32>
    tpu.vector_store %arg7[%c0_16, %c0_17], %29 {strides = array<i32>} : memref<128x128xf32, #tpu.memory_space<vmem>>, vector<128x128xf32>,
    return
  }
  func.func @transform_0(%arg0: i32) -> (i32, i32) {
    %c0_i32 = arith.constant 0 : i32
    %c0_i32_0 = arith.constant 0 : i32
    return %arg0, %c0_i32 : i32, i32
  }
  func.func @transform_1(%arg0: i32) -> (i32, i32) {
    %c0_i32 = arith.constant 0 : i32
    %c0_i32_0 = arith.constant 0 : i32
    return %arg0, %c0_i32 : i32, i32
  }
  func.func @transform_2(%arg0: i32) -> (i32, i32) {
    %c0_i32 = arith.constant 0 : i32
    %c0_i32_0 = arith.constant 0 : i32
    %c0_i32_1 = arith.constant 0 : i32
    return %c0_i32, %c0_i32_0 : i32, i32
  }
  func.func @transform_3(%arg0: i32) -> (i32, i32) {
    %c0_i32 = arith.constant 0 : i32
    %c0_i32_0 = arith.constant 0 : i32
    %c0_i32_1 = arith.constant 0 : i32
    return %c0_i32, %c0_i32_0 : i32, i32
  }
  func.func @transform_4(%arg0: i32) -> (i32, i32) {
    %c0_i32 = arith.constant 0 : i32
    %c0_i32_0 = arith.constant 0 : i32
    %c0_i32_1 = arith.constant 0 : i32
    return %c0_i32, %c0_i32_0 : i32, i32
  }
  func.func @transform_5(%arg0: i32) -> (i32, i32) {
    %c0_i32 = arith.constant 0 : i32
    %c0_i32_0 = arith.constant 0 : i32
    %c0_i32_1 = arith.constant 0 : i32
    return %c0_i32, %c0_i32_0 : i32, i32
  }
  func.func @transform_6(%arg0: i32) -> (i32, i32) {
    %c0_i32 = arith.constant 0 : i32
    %c0_i32_0 = arith.constant 0 : i32
    return %arg0, %c0_i32 : i32, i32
  }
}

</mosaic_0001>

<bundles_post_ra>
// kernel: tpu_custom_call.1
= control target key start
LH: loop header
LB: loop body
LE: loop exit
PB: predicated region body
PF: predicated region fallthrough
CT: control target
= control target key end

     0   :  { %s1884_s0 = inlined_call_operand.hbm [shape: f32[256,128], index: 0, kind: input, shape index: {}]   ;;  %s1885_s1 = inlined_call_operand.hbm [shape: f32[256,128], index: 1, kind: input, shape index: {}]   ;;  %s1886_s2 = inlined_call_operand.hbm [shape: f32[128,128], index: 2, kind: input, shape index: {}]   ;;  %s1887_s3 = inlined_call_operand.vmem [shape: f32[1,128], index: 3, kind: input, shape index: {}]   ;;  %s1888_s4 = inlined_call_operand.vmem [shape: f32[1,128], index: 4, kind: input, shape index: {}]   ;;  %s1889_s5 = inlined_call_operand.vmem [shape: f32[1,128], index: 5, kind: input, shape index: {}]   ;;  %s1890_s6 = inlined_call_operand.hbm [shape: f32[256,128], index: 6, kind: output, shape index: {}]  }
   0x1   :  { %1901 = sst [smem:[#allocation16_spill]] %s1884_s0 }
   0x2   :  { %1902 = sst [smem:[#allocation17_spill]] %s1886_s2 }
   0x3   :  { %11 = vsyncpa [#allocation3], 0 }
   0x4   :  { %13 = vsyncpa [#allocation3 + $0x1], 0 }
   0x5   :  { %14 = vsyncpa [#allocation6], 0 }
   0x6   :  { %16 = vsyncpa [#allocation6 + $0x1], 0 }
   0x7   :  { %17 = vsyncpa [#allocation4], 0 }
   0x8   :  { %19 = vsyncpa [#allocation4 + $0x1], 0  ;;  %s1368_s21 = smov 0   ;;  %s1370_s22 = smov 0  }
   0x9   :  { %s1372_s23 = smov 0   ;;  %s1374_s24 = smov 0  }
   0xa LB: > { %1903 = sst [smem:[#allocation13_spill]] %s1319_s23  ;;  %s1389_s25 = sadd.s32 4294967295, %s1323_s24   ;;  %s1323_s24 = sphi %s1374_s24, %s1923_s24   ;;  %s1319_s23 = sphi %s1372_s23, %s1925_s23   ;;  %s1315_s22 = sphi %s1370_s22, %s1927_s22   ;;  %s1311_s21 = sphi %s1368_s21, %s1926_s21  }
   0xb   : > { %s901_s26 = sadd.s32 4294967294, %s1323_s24   ;;  %p45_p0 = scmp.ne.s32.totalorder %s1315_s22, %s1311_s21 }
   0xc   : > { %p1891_p1 = scmp.eq.s32.totalorder %s1389_s25, 0  ;;  %p185_p3 = scmp.eq.s32.totalorder %s901_s26, 1 }
   0xd   : > { %p902_p5 = scmp.ge.s32.totalorder %s1323_s24, 1  ;;  %p192_p7 = scmp.lt.s32.totalorder %s1323_s24, 3 }
   0xe   : > { %p1398_p4 = por %p1891_p1, %p45_p0  ;;  %p1403_p6 = por %p185_p3, %p45_p0 }
   0xf   : > { %p1408_p8 = pnand %p902_p5, %p192_p7  ;;  %s1325_s30 = smov [#allocation7]  }
  0x10   : > { %s1904_s27 = scalar_select %p1398_p4, 1, 0 }
  0x11   : > { %s1905_s28 = scalar_select %p1403_p6, 1, 0 }
  0x12   : > { %s1906_s29 = scalar_select %p1408_p8, 1, 0 }
  0x13   : > { %s204_s7 = sshll.u32 %s1325_s30, 4  ;;  %p1073_p9 = pneg %p1408_p8  ;;  %s1412_s7 = int_to_ptr.vmem [resolvable:$true] %s204_s7 }
  0x14   : > { %s1424_s9 = sadd.s32 1, %s1323_s24   ;;  %s32_s10 = sadd.s32 1, %s1319_s23 }
  0x15   : > { %p1419_p11 = pnand %p1073_p9, %p1891_p1  ;;  %1908 = sst [smem:[#allocation14_spill]] %s1424_s9 }
  0x16   : > { %s29_s11 = ssub.s32 %s1323_s24, %s1424_s9  ;;  %s1909_s2 = sld [smem:[#allocation17_spill]] }
  0x17   : > { %p1163_p13 = pneg %p1419_p11 }
  0x1c   : > { %s1161_s14 = scalar_lea.hbm %s1909_s2, 2048 }
  0x1d   : > { %p1162_p12 = scmp.ne.s32.totalorder %s1909_s2, %s1161_s14  ;;  %p1168_p5 = scmp.lt.u32.totalorder %s1161_s14, %s1909_s2 }
  0x1f   : > { %p1164_p0 = pnand %p1163_p13, %p1162_p12 }
  0x21   : > { %p1165_p3 = pneg %p1164_p0 }
  0x23   : > { %p1170_p7 = pnand %p1168_p5, %p1165_p3 }
  0x25   : > { %1173 = shalt.err (!%p1170_p7)
}
  0x26   : > { %s1174_s19 = scalar_lea.vmem %s1412_s7, 2048  ;;  %p1182_p2 = scmp.lt.s32.totalorder %s1412_s7, %s1412_s7 }
  0x27   : > { %p1175_p9 = scmp.ne.s32.totalorder %s1412_s7, %s1174_s19  ;;  %p1183_p6 = scmp.lt.s32.totalorder %s1174_s19, %s1174_s19 }
  0x29   : > { %p1177_p10 = pnand %p1175_p9, %p1163_p13  ;;  %p1184_p4 = por %p1183_p6, %p1182_p2 }
  0x2b   : > { %p1178_p1 = pneg %p1177_p10 }
  0x2d   : > { %p1185_p8 = pnand %p1184_p4, %p1178_p1 }
  0x2f   : > { %1188 = shalt.err (!%p1185_p8)
}
  0x30   : > { %s1894_s20 = smov 128   ;;  %s1896_s26 = smov 8  }
  0x31   : > { %1076 = dma.hbm_to_vmem [thread:$0]  (!%p1419_p11), %s1909_s2, 2048, %s1412_s7, [#allocation6], %s1894_s20, %s1894_s20, %s1896_s26  }
  0x32   : > { %p30_p1 = scmp.eq.s32.totalorder %s29_s11, 0  ;;  %p39_p2 = scmp.ne.s32.totalorder %s1319_s23, %s1315_s22 }
  0x33   : > { %p40_p4 = scmp.eq.s32.totalorder %s1323_s24, 0  ;;  %p1089_p6 = scmp.lt.s32.totalorder %s1323_s24, 2 }
  0x34   : > { %s1458_s13 = scalar_select %p30_p1, %s1319_s23, %s32_s10  }
  0x35   : > { %p41_p8 = por %p40_p4, %p39_p2  ;;  %p1911_p10 = scmp.eq.s32.totalorder %s1389_s25, 1 }
  0x36   : > { %1910 = sst [smem:[#allocation15_spill]] %s1458_s13  ;;  %s227_s8 = sand.u32 1, %s1319_s23  }
  0x37   : > { %p1462_p12 = por %p1911_p10, %p39_p2  ;;  %s924_s15 = sshll.u32 %s1323_s24, 11 }
  0x38   : > { %s1468_s16 = sshll.u32 %s227_s8, 7  ;;  %s1913_s0 = sld [smem:[#allocation16_spill]] }
  0x39   : > { %s231_s10 = scalar_lea.vmem [#allocation2], %s1468_s16  ;;  %p1476_p11 = pnand %p1089_p6, %p41_p8 }
  0x3a   : > { %s238_s11 = sshll.u32 %s231_s10, 4  ;;  %s1485_s17 = scalar_lea.hbm %s1885_s1, %s924_s15  ;;  %s1480_s11 = int_to_ptr.vmem [resolvable:$true] %s238_s11 }
  0x3b   : > { %s1487_s18 = scalar_lea.sflag [#allocation3], %s227_s8  ;;  %p1191_p0 = pneg %p1476_p11 }
  0x3e   : > { %s1473_s7 = scalar_lea.hbm %s1913_s0, %s924_s15  ;;  %s1194_s2 = scalar_lea.hbm %s1913_s0, 4096 }
  0x3f   : > { %s1189_s20 = scalar_lea.hbm %s1473_s7, 2048  ;;  %p1195_p7 = scmp.lt.u32.totalorder %s1473_s7, %s1913_s0 }
  0x40   : > { %p1190_p13 = scmp.ne.s32.totalorder %s1473_s7, %s1189_s20  ;;  %p1196_p9 = scmp.lt.u32.totalorder %s1194_s2, %s1189_s20 }
  0x41   : > { %p1198_p2 = scmp.lt.u32.totalorder %s1189_s20, %s1473_s7 }
  0x42   : > { %p1192_p3 = pnand %p1191_p0, %p1190_p13  ;;  %p1197_p1 = por %p1196_p9, %p1195_p7 }
  0x44   : > { %p1193_p5 = pneg %p1192_p3  ;;  %p1199_p4 = por %p1198_p2, %p1197_p1 }
  0x46   : > { %p1200_p6 = pnand %p1199_p4, %p1193_p5 }
  0x48   : > { %1203 = shalt.err (!%p1200_p6)
}
  0x49   : > { %s1204_s8 = scalar_lea.vmem %s1480_s11, 2048  ;;  %s1328_s26 = smov [#allocation2]  }
  0x4a   : > { %p1205_p8 = scmp.ne.s32.totalorder %s1480_s11, %s1204_s8  ;;  %s1209_s15 = sshll.u32 %s1328_s26, 4  ;;  %s1210_s15 = int_to_ptr.vmem [resolvable:$false] %s1209_s15 }
  0x4b   : > { %s1211_s23 = scalar_lea.vmem %s1210_s15, 4096  ;;  %p1212_p3 = scmp.lt.s32.totalorder %s1480_s11, %s1210_s15 }
  0x4c   : > { %p1207_p10 = pnand %p1205_p8, %p1191_p0  ;;  %p1213_p7 = scmp.lt.s32.totalorder %s1211_s23, %s1204_s8 }
  0x4e   : > { %p1208_p13 = pneg %p1207_p10  ;;  %p1214_p9 = por %p1213_p7, %p1212_p3 }
  0x50   : > { %p1215_p1 = pnand %p1214_p9, %p1208_p13 }
  0x52   : > { %1218 = shalt.err (!%p1215_p1)
}
  0x53   : > { %s1915_s2 = smov 8   ;;  %s1916_s20 = smov 128  }
  0x54   : > { %1080 = dma.hbm_to_vmem [thread:$0]  (!%p1476_p11), %s1473_s7, 2048, %s1480_s11, %s1487_s18, %s1916_s20, %s1916_s20, %s1915_s2  }
  0x55   : > { %s252_s13 = scalar_lea.vmem [#allocation5], %s1468_s16  ;;  %s248_s12 = sand.u32 1, %s1323_s24  }
  0x56   : > { %s259_s30 = sshll.u32 %s252_s13, 4  ;;  %s1522_s10 = scalar_lea.sflag [#allocation6], %s248_s12  ;;  %s1520_s30 = int_to_ptr.vmem [resolvable:$true] %s259_s30 }
  0x57   : > { %s1219_s8 = scalar_lea.hbm %s1485_s17, 2048  ;;  %s1224_s23 = scalar_lea.hbm %s1885_s1, 4096 }
  0x58   : > { %p1220_p5 = scmp.ne.s32.totalorder %s1485_s17, %s1219_s8  ;;  %p1225_p6 = scmp.lt.u32.totalorder %s1485_s17, %s1885_s1 }
  0x59   : > { %p1226_p8 = scmp.lt.u32.totalorder %s1224_s23, %s1219_s8  ;;  %p1228_p13 = scmp.lt.u32.totalorder %s1219_s8, %s1485_s17 }
  0x5a   : > { %p1222_p2 = pnand %p1220_p5, %p1191_p0 }
  0x5b   : > { %p1227_p10 = por %p1226_p8, %p1225_p6 }
  0x5c   : > { %p1223_p4 = pneg %p1222_p2 }
  0x5d   : > { %p1229_p3 = por %p1228_p13, %p1227_p10 }
  0x5f   : > { %p1230_p7 = pnand %p1229_p3, %p1223_p4 }
  0x61   : > { %1233 = shalt.err (!%p1230_p7)
}
  0x62   : > { %s1234_s16 = scalar_lea.vmem %s1520_s30, 2048  ;;  %s1329_s7 = smov [#allocation5]  }
  0x63   : > { %p1235_p9 = scmp.ne.s32.totalorder %s1520_s30, %s1234_s16  ;;  %s1239_s11 = sshll.u32 %s1329_s7, 4  ;;  %s1240_s11 = int_to_ptr.vmem [resolvable:$false] %s1239_s11 }
  0x64   : > { %s1241_s0 = scalar_lea.vmem %s1240_s11, 4096  ;;  %p1242_p2 = scmp.lt.s32.totalorder %s1520_s30, %s1240_s11 }
  0x65   : > { %p1237_p1 = pnand %p1235_p9, %p1191_p0  ;;  %p1243_p6 = scmp.lt.s32.totalorder %s1241_s0, %s1234_s16 }
  0x67   : > { %p1238_p5 = pneg %p1237_p1  ;;  %p1244_p8 = por %p1243_p6, %p1242_p2 }
  0x69   : > { %p1245_p10 = pnand %p1244_p8, %p1238_p5 }
  0x6b   : > { %1248 = shalt.err (!%p1245_p10)
}
  0x6c   : > { %1083 = dma.hbm_to_vmem [thread:$0]  (!%p1476_p11), %s1485_s17, 2048, %s1520_s30, %s1522_s10, %s1916_s20, %s1916_s20, %s1915_s2  }
  0x6d   : > { %p1917_p0 = scmp.ne.s32.totalorder %s1906_s29, 0 }
  0x6e   : > { %s1554_s9 = sand.u32 (!%p1917_p0), 1, %s1315_s22   ;;  %p1918_p4 = scmp.ne.s32.totalorder (!%p1917_p0), %s1904_s27, 0 }
  0x6f   : > { %271 = sbr.rel (%p1917_p0) target bundleno = 767 (0x2ff), region = 44  ;;  %s1557_s18 = sshll.u32 (!%p1917_p0), %s1554_s9, 7 }
  0x70   : > { %s274_s19 = scalar_lea.sflag (!%p1917_p0), [#allocation3], %s1554_s9  ;;  %s1561_s13 = scalar_lea.vmem (!%p1917_p0), [#allocation2], %s1557_s18 }
  0x76   : > { %1294 = dma.done.wait (%p1918_p4), %s274_s19, 2048  }
  0x77   : > { %1296 = vsyncadd (%p1918_p4), %s274_s19, 4294965248  ;;  %s282_s29 = sand.u32 1, %s1389_s25   ;;  %s1569_s2 = scalar_lea.vmem [#allocation5], %s1557_s18 }
  0x78   : > { %s283_s17 = scalar_lea.sflag [#allocation6], %s282_s29 }
  0x79   : > { %1298 = dma.done.wait (%p1918_p4), %s283_s17, 2048  }
  0x7a   : > { %1300 = vsyncadd (%p1918_p4), %s283_s17, 4294965248  ;;  %p1919_p11 = scmp.eq.s32.totalorder %s1389_s25, 0 }
  0x7c   : > { %1302 = dma.done.wait (%p1919_p11), [#allocation6], 2048   ;;  %p1920_p13 = pmov %p1919_p11 }
  0x7d   : > { %v343_v0 = vld [vmem:[#allocation7] sm:$0xff]  ;;  %v344_v1 = vld [vmem:[#allocation7 + $0x8] sm:$0xff]  ;;  %v345_v2 = vld [vmem:[#allocation7 + $0x10] sm:$0xff]  ;;  %s1772_s26 = scalar_lea.vmem [#allocation8], %s1557_s18  ;;  %s926_s15 = sshll.u32 %s1389_s25, 11 }
  0x7e   : > { %1304 = vsyncadd (%p1920_p13), [#allocation6], 4294965248  ;;  %v1015_v3 = vpack.c.bf16 %v344_v1, %v343_v0  ;;  %v346_v4 = vld [vmem:[#allocation7 + $0x18] sm:$0xff]  ;;  %v327_v6 = vld [vmem:[%s1561_s13] sm:$0xff]  ;;  %s796_s23 = sshll.u32 %s1772_s26, 4  ;;  %s1836_s11 = scalar_lea.hbm %s1890_s6, %s926_s15  ;;  %s1838_s23 = int_to_ptr.vmem [resolvable:$true] %s796_s23 }
  0x7f   : > { %v1019_v5 = vpack.c.bf16 %v346_v4, %v345_v2  ;;  %v335_v7 = vld [vmem:[%s1561_s13 + $0x40] sm:$0xff]  ;;  %v348_v9 = vld [vmem:[#allocation7 + $0x28] sm:$0xff]  ;;  %991 = vmatprep.mubr.f32.mxu0 %v327_v6  ;;  %v349_v11 = vld [vmem:[#allocation7 + $0x30] sm:$0xff]  ;;  %s783_s25 = scalar_lea.sflag [#allocation4], %s1554_s9  ;;  %s1249_s0 = scalar_lea.vmem %s1838_s23, 2048 }
  0x80   : > { %1016 = vmatprep.subr.bf16.mxu0 %v1015_v3  ;;  %1047 = vmatprep.subr.bf16.mxu1 %v1015_v3  ;;  %v347_v8 = vld [vmem:[#allocation7 + $0x20] sm:$0xff]  ;;  %v350_v12 = vld [vmem:[#allocation7 + $0x38] sm:$0xff]  ;;  %v352_v15 = vld [vmem:[#allocation7 + $0x48] sm:$0xff]  ;;  %p1250_p3 = scmp.ne.s32.totalorder %s1838_s23, %s1249_s0  ;;  %s1330_s18 = smov [#allocation8]  }
  0x81   : > { %1018 = vmatpush3.bf16.xpose.msra.mxu0 %v1015_v3  ;;  %1055 = vmatpush3.bf16.xpose.msra.mxu1 %v1015_v3  ;;  %v1023_v10 = vpack.c.bf16 %v348_v9, %v347_v8  ;;  %v1027_v13 = vpack.c.bf16 %v350_v12, %v349_v11  ;;  %v351_v14 = vld [vmem:[#allocation7 + $0x40] sm:$0xff]  ;;  %v353_v17 = vld [vmem:[#allocation7 + $0x50] sm:$0xff]  ;;  %v354_v18 = vld [vmem:[#allocation7 + $0x58] sm:$0xff]  ;;  %s1253_s19 = sshll.u32 %s1330_s18, 4  ;;  %s1254_s19 = int_to_ptr.vmem [resolvable:$false] %s1253_s19 }
  0x82   : > { %1020 = vmatprep.subr.bf16.mxu0 %v1019_v5  ;;  %1048 = vmatprep.subr.bf16.mxu1 %v1019_v5  ;;  %v1031_v16 = vpack.c.bf16 %v352_v15, %v351_v14  ;;  %v1035_v19 = vpack.c.bf16 %v354_v18, %v353_v17  ;;  %v355_v20 = vld [vmem:[#allocation7 + $0x60] sm:$0xff]  ;;  %v356_v21 = vld [vmem:[#allocation7 + $0x68] sm:$0xff]  ;;  %v357_v23 = vld [vmem:[#allocation7 + $0x70] sm:$0xff]  ;;  %p1251_p7 = pnand %p1250_p3, %p1462_p12  ;;  %p1256_p1 = scmp.lt.s32.totalorder %s1838_s23, %s1254_s19 }
  0x83   : > { %1003 = vmatprep.mubr.f32.mxu1 %v335_v7  ;;  %v1039_v22 = vpack.c.bf16 %v356_v21, %v355_v20  ;;  %v358_v24 = vld [vmem:[#allocation7 + $0x78] sm:$0xff]  ;;  %v328_v26 = vld [vmem:[%s1561_s13 + $0x8] sm:$0xff]  ;;  %v329_v28 = vld [vmem:[%s1561_s13 + $0x10] sm:$0xff] }
  0x84   : > { %v1043_v25 = vpack.c.bf16 %v358_v24, %v357_v23  ;;  %v336_v27 = vld [vmem:[%s1561_s13 + $0x48] sm:$0xff]  ;;  %v337_v29 = vld [vmem:[%s1561_s13 + $0x50] sm:$0xff]  ;;  %v330_v30 = vld [vmem:[%s1561_s13 + $0x18] sm:$0xff]  ;;  %p1252_p9 = pneg %p1251_p7 }
  0x85   : > { %v338_v31 = vld [vmem:[%s1561_s13 + $0x58] sm:$0xff]  ;;  %v331_v32 = vld [vmem:[%s1561_s13 + $0x20] sm:$0xff]  ;;  %v332_v34 = vld [vmem:[%s1561_s13 + $0x28] sm:$0xff] }
  0x86   : > { %v339_v33 = vld [vmem:[%s1561_s13 + $0x60] sm:$0xff]  ;;  %v340_v35 = vld [vmem:[%s1561_s13 + $0x68] sm:$0xff]  ;;  %v333_v36 = vld [vmem:[%s1561_s13 + $0x30] sm:$0xff] }
  0x87   : > { %v341_v37 = vld [vmem:[%s1561_s13 + $0x70] sm:$0xff]  ;;  %v334_v38 = vld [vmem:[%s1561_s13 + $0x38] sm:$0xff]  ;;  %v1598_v40 = vld [vmem:[%s1887_s3] ss:$0 sm:$0xff] }
  0x88   : > { %v342_v39 = vld [vmem:[%s1561_s13 + $0x78] sm:$0xff]  ;;  %v520_v43 = vld [vmem:[%s1569_s2 + $0x48] sm:$0xff]  ;;  %v511_v55 = vld [vmem:[%s1569_s2] sm:$0xff]  ;;  %s1255_s13 = scalar_lea.vmem %s1254_s19, 4096 }
  0x89   : > { %1022 = vmatpush3.bf16.xpose.msra.mxu0 %v1019_v5  ;;  %1056 = vmatpush3.bf16.xpose.msra.mxu1 %v1019_v5  ;;  %v512_v44 = vld [vmem:[%s1569_s2 + $0x8] sm:$0xff]  ;;  %v514_v54 = vld [vmem:[%s1569_s2 + $0x18] sm:$0xff]  ;;  %v519_v0 = vld [vmem:[%s1569_s2 + $0x40] sm:$0xff]  ;;  %p1257_p5 = scmp.lt.s32.totalorder %s1255_s13, %s1249_s0 }
  0x8a   : > { %1024 = vmatprep.subr.bf16.mxu0 %v1023_v10  ;;  %1049 = vmatprep.subr.bf16.mxu1 %v1023_v10  ;;  %v522_v60 = vld [vmem:[%s1569_s2 + $0x58] sm:$0xff]  ;;  %v513_v9 = vld [vmem:[%s1569_s2 + $0x10] sm:$0xff]  ;;  %v516_v17 = vld [vmem:[%s1569_s2 + $0x28] sm:$0xff] }
  0x8b   : > { %v515_v18 = vld [vmem:[%s1569_s2 + $0x20] sm:$0xff]  ;;  %p1258_p2 = por %p1257_p5, %p1256_p1 }
  0x8d   : > { %p1259_p6 = pnand %p1258_p2, %p1252_p9 }
  0x91   : > { %1026 = vmatpush3.bf16.xpose.msra.mxu0 %v1023_v10  ;;  %1057 = vmatpush3.bf16.xpose.msra.mxu1 %v1023_v10  ;;  %v521_v10 = vld [vmem:[%s1569_s2 + $0x50] sm:$0xff] }
  0x92   : > { %1028 = vmatprep.subr.bf16.mxu0 %v1027_v13  ;;  %1050 = vmatprep.subr.bf16.mxu1 %v1027_v13 }
  0x99   : > { %1030 = vmatpush3.bf16.xpose.msra.mxu0 %v1027_v13  ;;  %1058 = vmatpush3.bf16.xpose.msra.mxu1 %v1027_v13 }
  0x9a   : > { %1032 = vmatprep.subr.bf16.mxu0 %v1031_v16  ;;  %1051 = vmatprep.subr.bf16.mxu1 %v1031_v16 }
  0xa1   : > { %1034 = vmatpush3.bf16.xpose.msra.mxu0 %v1031_v16  ;;  %1059 = vmatpush3.bf16.xpose.msra.mxu1 %v1031_v16 }
  0xa2   : > { %1036 = vmatprep.subr.bf16.mxu0 %v1035_v19  ;;  %1052 = vmatprep.subr.bf16.mxu1 %v1035_v19 }
  0xa9   : > { %1038 = vmatpush3.bf16.xpose.msra.mxu0 %v1035_v19  ;;  %1060 = vmatpush3.bf16.xpose.msra.mxu1 %v1035_v19 }
  0xaa   : > { %1040 = vmatprep.subr.bf16.mxu0 %v1039_v22  ;;  %1053 = vmatprep.subr.bf16.mxu1 %v1039_v22 }
  0xb1   : > { %1042 = vmatpush3.bf16.xpose.msra.mxu0 %v1039_v22  ;;  %1061 = vmatpush3.bf16.xpose.msra.mxu1 %v1039_v22 }
  0xb2   : > { %1044 = vmatprep.subr.bf16.mxu0 %v1043_v25  ;;  %1054 = vmatprep.subr.bf16.mxu1 %v1043_v25 }
  0xb9   : > { %1046 = vmatpush3.bf16.xpose.msra.mxu0 %v1043_v25  ;;  %1062 = vmatpush3.bf16.xpose.msra.mxu1 %v1043_v25  ;;  %v524_v25 = vld [vmem:[%s1569_s2 + $0x68] sm:$0xff] }
  0xc0   : > { %992 = vmatmul.mubr.f32.vlgmr.msra.gmra.mrb[0].mxu0 %v328_v26  ;;  %1004 = vmatmul.mubr.f32.vlgmr.msra.gmra.mrb[0].mxu1 %v336_v27  ;;  %v523_v26 = vld [vmem:[%s1569_s2 + $0x60] sm:$0xff] }
  0xc1   : > { %994 = vmatprep.mubr.f32.mxu0 %v329_v28  ;;  %1006 = vmatprep.mubr.f32.mxu1 %v337_v29 }
  0xc4   : > { %995 = vmatmul.mubr.f32.gmra.mrb[2].mxu0 %v330_v30  ;;  %1007 = vmatmul.mubr.f32.gmra.mrb[2].mxu1 %v338_v31  ;;  %v518_v31 = vld [vmem:[%s1569_s2 + $0x38] sm:$0xff] }
  0xc5   : > { %997 = vmatprep.mubr.f32.mxu0 %v331_v32  ;;  %1009 = vmatprep.mubr.f32.mxu1 %v339_v33  ;;  %v517_v32 = vld [vmem:[%s1569_s2 + $0x30] sm:$0xff] }
  0xc8   : > { %998 = vmatmul.mubr.f32.gmra.mrb[4].mxu0 %v332_v34  ;;  %1010 = vmatmul.mubr.f32.gmra.mrb[4].mxu1 %v340_v35 }
  0xc9   : > { %1000 = vmatprep.mubr.f32.mxu0 %v333_v36  ;;  %1012 = vmatprep.mubr.f32.mxu1 %v341_v37  ;;  %v526_v37 = vld [vmem:[%s1569_s2 + $0x78] sm:$0xff] }
  0xcc   : > { %1001 = vmatmul.mubr.f32.gmra.mrb[6].mxu0 %v334_v38  ;;  %1013 = vmatmul.mubr.f32.gmra.mrb[6].mxu1 %v342_v39  ;;  %v525_v38 = vld [vmem:[%s1569_s2 + $0x70] sm:$0xff] }
 0x193   : > { %v993_v41 = vpop.f32.mrb[0].mxu0  ;;  %v1005_v42 = vpop.f32.mrb[0].mxu1 }
 0x194   : > { %v438_v45 = vadd.f32 %v993_v41, %v1598_v40  ;;  %v478_v46 = vadd.f32 %v1005_v42, %v1598_v40  ;;  %v432_v47 = vpop.f32.mrb[1].mxu0  ;;  %v472_v48 = vpop.f32.mrb[1].mxu1 }
 0x195   : > { %v433_v49 = vadd.f32 %v1598_v40, %v432_v47  ;;  %v473_v61 = vadd.f32 %v1598_v40, %v472_v48 }
 0x196   : > { %v1605_v50 = vadd.f32 %v520_v43, %v478_v46  ;;  %v1607_v51 = vadd.f32 %v512_v44, %v438_v45 }
 0x197   : > { %v996_v52 = vpop.f32.mrb[2].mxu0  ;;  %v1008_v53 = vpop.f32.mrb[2].mxu1  ;;  %v1619_v63 = vadd.f32 %v511_v55, %v433_v49  ;;  %v1628_v8 = vadd.f32 %v519_v0, %v473_v61 }
 0x198   : > { %v448_v56 = vadd.f32 %v996_v52, %v1598_v40  ;;  %563 = vadd.xlane.f32.xlu1 %v1605_v50  ;;  %547 = vadd.xlane.f32.xlu0 %v1607_v51  ;;  %v442_v57 = vpop.f32.mrb[3].mxu0  ;;  %v488_v58 = vadd.f32 %v1008_v53, %v1598_v40  ;;  %v482_v59 = vpop.f32.mrb[3].mxu1 }
 0x199   : > { %v443_v6 = vadd.f32 %v1598_v40, %v442_v57  ;;  %v483_v7 = vadd.f32 %v1598_v40, %v482_v59 }
 0x19a   : > { %v1617_v62 = vadd.f32 %v514_v54, %v448_v56  ;;  %v1624_v3 = vadd.f32 %v522_v60, %v488_v58 }
 0x19b   : > { %v999_v1 = vpop.f32.mrb[4].mxu0  ;;  %v1011_v2 = vpop.f32.mrb[4].mxu1  ;;  %v531_v19 = vadd.f32 %v513_v9, %v443_v6  ;;  %v1638_v20 = vadd.f32 %v521_v10, %v483_v7 }
 0x19c   : > { %551 = vadd.xlane.f32.xlu1 %v1617_v62  ;;  %545 = vadd.xlane.f32.xlu0 %v1619_v63  ;;  %v452_v4 = vpop.f32.mrb[5].mxu0  ;;  %v492_v5 = vpop.f32.mrb[5].mxu1  ;;  %v458_v13 = vadd.f32 %v999_v1, %v1598_v40  ;;  %v498_v21 = vadd.f32 %v1011_v2, %v1598_v40 }
 0x19d   : > { %v453_v14 = vadd.f32 %v1598_v40, %v452_v4  ;;  %v493_v22 = vadd.f32 %v1598_v40, %v492_v5 }
 0x19e   : > { %v1643_v23 = vadd.f32 %v516_v17, %v458_v13  ;;  %v1649_v27 = vadd.f32 %v524_v25, %v498_v21 }
 0x19f   : > { %v1002_v11 = vpop.f32.mrb[6].mxu0  ;;  %v1014_v12 = vpop.f32.mrb[6].mxu1  ;;  %v1645_v24 = vadd.f32 %v515_v18, %v453_v14  ;;  %v1655_v30 = vadd.f32 %v523_v26, %v493_v22 }
 0x1a0   : > { %567 = vadd.xlane.f32.xlu1 %v1624_v3  ;;  %561 = vadd.xlane.f32.xlu0 %v1628_v8  ;;  %v462_v15 = vpop.f32.mrb[7].mxu0  ;;  %v502_v16 = vpop.f32.mrb[7].mxu1  ;;  %v468_v28 = vadd.f32 %v1002_v11, %v1598_v40  ;;  %v508_v33 = vadd.f32 %v1014_v12, %v1598_v40 }
 0x1a1   : > { %v463_v29 = vadd.f32 %v1598_v40, %v462_v15  ;;  %v503_v34 = vadd.f32 %v1598_v40, %v502_v16 }
 0x1a2   : > { %v1663_v35 = vadd.f32 %v518_v31, %v468_v28  ;;  %v1671_v39 = vadd.f32 %v526_v37, %v508_v33 }
 0x1a3   : > { %v1665_v36 = vadd.f32 %v517_v32, %v463_v29  ;;  %v1673_v41 = vadd.f32 %v525_v38, %v503_v34 }
 0x1a4   : > { %549 = vadd.xlane.f32.xlu1 %v531_v19  ;;  %565 = vadd.xlane.f32.xlu0 %v1638_v20 }
 0x1a8   : > { %555 = vadd.xlane.f32.xlu1 %v1643_v23  ;;  %553 = vadd.xlane.f32.xlu0 %v1645_v24 }
 0x1ac   : > { %571 = vadd.xlane.f32.xlu1 %v1649_v27  ;;  %569 = vadd.xlane.f32.xlu0 %v1655_v30 }
 0x1b0   : > { %559 = vadd.xlane.f32.xlu1 %v1663_v35  ;;  %557 = vadd.xlane.f32.xlu0 %v1665_v36 }
 0x1b4   : > { %575 = vadd.xlane.f32.xlu1 %v1671_v39  ;;  %573 = vadd.xlane.f32.xlu0 %v1673_v41 }
 0x225   : > { %v564_v42 = vpop.xlane.xlu1 %563  ;;  %v548_v40 = vpop.xlane.xlu0 %547 }
 0x226   : > { %v587_v43 = vmul.f32 0.0078125, %v564_v42  ;;  %v579_v44 = vmul.f32 0.0078125, %v548_v40 }
 0x228   : > { %v1678_v45 = vsub.f32 %v1607_v51, %v579_v44  ;;  %v1681_v48 = vsub.f32 %v1605_v50, %v587_v43 }
 0x229   : > { %v552_v46 = vpop.xlane.xlu1 %551  ;;  %v546_v47 = vpop.xlane.xlu0 %545 }
 0x22a   : > { %v581_v49 = vmul.f32 0.0078125, %v552_v46  ;;  %v578_v52 = vmul.f32 0.0078125, %v546_v47  ;;  %v611_v53 = vmul.f32 %v1678_v45, %v1678_v45  ;;  %v619_v50 = vmul.f32 %v1681_v48, %v1681_v48 }
 0x22c   : > { %v1686_v54 = vsub.f32 %v1619_v63, %v578_v52  ;;  %628 = vadd.xlane.f32.xlu1 %v611_v53  ;;  %v1689_v55 = vsub.f32 %v1617_v62, %v581_v49 }
 0x22d   : > { %v568_v56 = vpop.xlane.xlu1 %567  ;;  %v562_v51 = vpop.xlane.xlu0 %561 }
 0x22e   : > { %v589_v57 = vmul.f32 0.0078125, %v568_v56  ;;  %v586_v58 = vmul.f32 0.0078125, %v562_v51  ;;  %v610_v59 = vmul.f32 %v1686_v54, %v1686_v54  ;;  %v613_v62 = vmul.f32 %v1689_v55, %v1689_v55 }
 0x230   : > { %v1696_v60 = vsub.f32 %v1628_v8, %v586_v58  ;;  %644 = vadd.xlane.f32.xlu1 %v619_v50  ;;  %626 = vadd.xlane.f32.xlu0 %v610_v59  ;;  %v1701_v0 = vsub.f32 %v1624_v3, %v589_v57 }
 0x231   : > { %v550_v61 = vpop.xlane.xlu1 %549  ;;  %v566_v63 = vpop.xlane.xlu0 %565 }
 0x232   : > { %v580_v1 = vmul.f32 0.0078125, %v550_v61  ;;  %v588_v2 = vmul.f32 0.0078125, %v566_v63  ;;  %v618_v4 = vmul.f32 %v1696_v60, %v1696_v60  ;;  %v621_v3 = vmul.f32 %v1701_v0, %v1701_v0 }
 0x234   : > { %v1705_v5 = vsub.f32 %v531_v19, %v580_v1  ;;  %632 = vadd.xlane.f32.xlu1 %v613_v62  ;;  %642 = vadd.xlane.f32.xlu0 %v618_v4  ;;  %v1708_v6 = vsub.f32 %v1638_v20, %v588_v2  ;;  %v1759_v4 = vld [vmem:[%s1888_s4] ss:$0 sm:$0xff] }
 0x235   : > { %v556_v7 = vpop.xlane.xlu1 %555  ;;  %v554_v8 = vpop.xlane.xlu0 %553 }
 0x236   : > { %v583_v9 = vmul.f32 0.0078125, %v556_v7  ;;  %v582_v10 = vmul.f32 0.0078125, %v554_v8  ;;  %v612_v11 = vmul.f32 %v1705_v5, %v1705_v5  ;;  %v620_v15 = vmul.f32 %v1708_v6, %v1708_v6 }
 0x238   : > { %v1715_v12 = vsub.f32 %v1643_v23, %v583_v9  ;;  %648 = vadd.xlane.f32.xlu1 %v621_v3  ;;  %630 = vadd.xlane.f32.xlu0 %v612_v11  ;;  %v1720_v16 = vsub.f32 %v1645_v24, %v582_v10  ;;  %v1765_v11 = vld [vmem:[%s1889_s5] ss:$0 sm:$0xff] }
 0x239   : > { %v572_v13 = vpop.xlane.xlu1 %571  ;;  %v570_v14 = vpop.xlane.xlu0 %569 }
 0x23a   : > { %v591_v17 = vmul.f32 0.0078125, %v572_v13  ;;  %v590_v18 = vmul.f32 0.0078125, %v570_v14  ;;  %v615_v19 = vmul.f32 %v1715_v12, %v1715_v12  ;;  %v614_v28 = vmul.f32 %v1720_v16, %v1720_v16 }
 0x23c   : > { %v1725_v20 = vsub.f32 %v1649_v27, %v591_v17  ;;  %636 = vadd.xlane.f32.xlu1 %v615_v19  ;;  %646 = vadd.xlane.f32.xlu0 %v620_v15  ;;  %v1728_v21 = vsub.f32 %v1655_v30, %v590_v18 }
 0x23d   : > { %v560_v22 = vpop.xlane.xlu1 %559  ;;  %v558_v23 = vpop.xlane.xlu0 %557 }
 0x23e   : > { %v585_v25 = vmul.f32 0.0078125, %v560_v22  ;;  %v584_v26 = vmul.f32 0.0078125, %v558_v23  ;;  %v623_v24 = vmul.f32 %v1725_v20, %v1725_v20  ;;  %v622_v30 = vmul.f32 %v1728_v21, %v1728_v21 }
 0x240   : > { %v1735_v29 = vsub.f32 %v1663_v35, %v585_v25  ;;  %652 = vadd.xlane.f32.xlu1 %v623_v24  ;;  %634 = vadd.xlane.f32.xlu0 %v614_v28  ;;  %v1740_v32 = vsub.f32 %v1665_v36, %v584_v26 }
 0x241   : > { %v576_v27 = vpop.xlane.xlu1 %575  ;;  %v574_v31 = vpop.xlane.xlu0 %573 }
 0x242   : > { %v593_v33 = vmul.f32 0.0078125, %v576_v27  ;;  %v592_v34 = vmul.f32 0.0078125, %v574_v31  ;;  %v617_v37 = vmul.f32 %v1735_v29, %v1735_v29  ;;  %v616_v36 = vmul.f32 %v1740_v32, %v1740_v32 }
 0x244   : > { %v1745_v38 = vsub.f32 %v1671_v39, %v593_v33  ;;  %640 = vadd.xlane.f32.xlu1 %v617_v37  ;;  %650 = vadd.xlane.f32.xlu0 %v622_v30  ;;  %v1748_v35 = vsub.f32 %v1673_v41, %v592_v34 }
 0x246   : > { %v625_v42 = vmul.f32 %v1745_v38, %v1745_v38  ;;  %v624_v40 = vmul.f32 %v1748_v35, %v1748_v35 }
 0x248   : > { %656 = vadd.xlane.f32.xlu1 %v625_v42  ;;  %638 = vadd.xlane.f32.xlu0 %v616_v36 }
 0x24c   : > { %654 = vadd.xlane.f32.xlu0 %v624_v40 }
 0x2b9   : > { %v629_v43 = vpop.xlane.xlu1 %628 }
 0x2ba   : > { %v659_v39 = vmul.f32 0.0078125, %v629_v43 }
 0x2bc   : > { %v675_v44 = vadd.f32 1e-05, %v659_v39 }
 0x2bd   : > { %v645_v46 = vpop.xlane.xlu1 %644  ;;  %v627_v47 = vpop.xlane.xlu0 %626 }
 0x2be   : > { %1129 = vrsqrt.f32 %v675_v44  ;;  %v667_v41 = vmul.f32 0.0078125, %v645_v46  ;;  %v658_v49 = vmul.f32 0.0078125, %v627_v47 }
 0x2c0   : > { %v683_v52 = vadd.f32 1e-05, %v667_v41  ;;  %v674_v53 = vadd.f32 1e-05, %v658_v49 }
 0x2c1   : > { %v633_v56 = vpop.xlane.xlu1 %632  ;;  %v643_v51 = vpop.xlane.xlu0 %642 }
 0x2c2   : > { %1131 = vrsqrt.f32 %v683_v52  ;;  %v661_v57 = vmul.f32 0.0078125, %v633_v56  ;;  %v666_v58 = vmul.f32 0.0078125, %v643_v51 }
 0x2c3   : > { %1133 = vrsqrt.f32 %v674_v53 }
 0x2c4   : > { %v677_v50 = vadd.f32 1e-05, %v661_v57  ;;  %v682_v59 = vadd.f32 1e-05, %v666_v58 }
 0x2c5   : > { %v649_v61 = vpop.xlane.xlu1 %648  ;;  %v631_v63 = vpop.xlane.xlu0 %630 }
 0x2c6   : > { %1135 = vrsqrt.f32 %v677_v50  ;;  %v669_v62 = vmul.f32 0.0078125, %v649_v61  ;;  %v660_v1 = vmul.f32 0.0078125, %v631_v63 }
 0x2c7   : > { %1137 = vrsqrt.f32 %v682_v59 }
 0x2c8   : > { %v1130_v2 = vpop.eup %1129  ;;  %v685_v7 = vadd.f32 1e-05, %v669_v62  ;;  %v676_v8 = vadd.f32 1e-05, %v660_v1 }
 0x2c9   : > { %v707_v9 = vmul.f32 %v1130_v2, %v1678_v45  ;;  %v637_v10 = vpop.xlane.xlu1 %636  ;;  %v647_v3 = vpop.xlane.xlu0 %646 }
 0x2ca   : > { %1139 = vrsqrt.f32 %v685_v7  ;;  %v663_v13 = vmul.f32 0.0078125, %v637_v10  ;;  %v668_v14 = vmul.f32 0.0078125, %v647_v3 }
 0x2cb   : > { %v729_v15 = vmul.f32 %v1759_v4, %v707_v9  ;;  %1141 = vrsqrt.f32 %v676_v8 }
 0x2cc   : > { %v1132_v17 = vpop.eup %1131  ;;  %v679_v18 = vadd.f32 1e-05, %v663_v13  ;;  %v684_v19 = vadd.f32 1e-05, %v668_v14 }
 0x2cd   : > { %v1134_v22 = vpop.eup %1133  ;;  %v751_v45 = vadd.f32 %v1765_v11, %v729_v15  ;;  %v715_v23 = vmul.f32 %v1132_v17, %v1681_v48  ;;  %v653_v25 = vpop.xlane.xlu1 %652 }
 0x2ce   : > { %v635_v26 = vpop.xlane.xlu0 %634  ;;  %v706_v24 = vmul.f32 %v1134_v22, %v1686_v54  ;;  %1143 = vrsqrt.f32 %v679_v18  ;;  %v671_v28 = vmul.f32 0.0078125, %v653_v25 }
 0x2cf   : > { %v662_v27 = vmul.f32 0.0078125, %v635_v26  ;;  %767 = vst [vmem:[%s1772_s26 + $0x8] sm:$0xff] %v751_v45  ;;  %v737_v31 = vmul.f32 %v1759_v4, %v715_v23  ;;  %1145 = vrsqrt.f32 %v684_v19 }
 0x2d0   : > { %v1136_v30 = vpop.eup %1135  ;;  %v728_v33 = vmul.f32 %v1759_v4, %v706_v24  ;;  %v687_v34 = vadd.f32 1e-05, %v671_v28 }
 0x2d1   : > { %v678_v48 = vadd.f32 1e-05, %v662_v27  ;;  %v1138_v37 = vpop.eup %1137  ;;  %v759_v54 = vadd.f32 %v1765_v11, %v737_v31  ;;  %v709_v42 = vmul.f32 %v1136_v30, %v1689_v55  ;;  %v641_v36 = vpop.xlane.xlu1 %640 }
 0x2d2   : > { %v651_v40 = vpop.xlane.xlu0 %650  ;;  %v750_v43 = vadd.f32 %v1765_v11, %v728_v33  ;;  %v714_v39 = vmul.f32 %v1138_v37, %v1696_v60  ;;  %1147 = vrsqrt.f32 %v687_v34  ;;  %v665_v44 = vmul.f32 0.0078125, %v641_v36 }
 0x2d3   : > { %775 = vst [vmem:[%s1772_s26 + $0x48] sm:$0xff] %v759_v54  ;;  %v731_v46 = vmul.f32 %v1759_v4, %v709_v42  ;;  %1149 = vrsqrt.f32 %v678_v48  ;;  %v670_v47 = vmul.f32 0.0078125, %v651_v40 }
 0x2d4   : > { %v1140_v41 = vpop.eup %1139  ;;  %766 = vst [vmem:[%s1772_s26] sm:$0xff] %v750_v43  ;;  %v736_v49 = vmul.f32 %v1759_v4, %v714_v39  ;;  %v681_v52 = vadd.f32 1e-05, %v665_v44 }
 0x2d5   : > { %v1142_v55 = vpop.eup %1141  ;;  %v753_v53 = vadd.f32 %v1765_v11, %v731_v46  ;;  %v717_v56 = vmul.f32 %v1140_v41, %v1701_v0  ;;  %v686_v60 = vadd.f32 1e-05, %v670_v47  ;;  %v657_v51 = vpop.xlane.xlu1 %656 }
 0x2d6   : > { %v639_v57 = vpop.xlane.xlu0 %638  ;;  %v758_v58 = vadd.f32 %v1765_v11, %v736_v49  ;;  %v708_v50 = vmul.f32 %v1142_v55, %v1705_v5  ;;  %1151 = vrsqrt.f32 %v681_v52  ;;  %v673_v59 = vmul.f32 0.0078125, %v657_v51 }
 0x2d7   : > { %769 = vst [vmem:[%s1772_s26 + $0x18] sm:$0xff] %v753_v53  ;;  %v739_v61 = vmul.f32 %v1759_v4, %v717_v56  ;;  %1153 = vrsqrt.f32 %v686_v60  ;;  %v664_v63 = vmul.f32 0.0078125, %v639_v57 }
 0x2d8   : > { %v1144_v62 = vpop.eup %1143  ;;  %774 = vst [vmem:[%s1772_s26 + $0x40] sm:$0xff] %v758_v58  ;;  %v730_v0 = vmul.f32 %v1759_v4, %v708_v50  ;;  %v689_v1 = vadd.f32 1e-05, %v673_v59 }
 0x2d9   : > { %v1146_v2 = vpop.eup %1145  ;;  %v761_v7 = vadd.f32 %v1765_v11, %v739_v61  ;;  %v711_v8 = vmul.f32 %v1144_v62, %v1715_v12  ;;  %v680_v5 = vadd.f32 1e-05, %v664_v63 }
 0x2da   : > { %v655_v9 = vpop.xlane.xlu0 %654  ;;  %v752_v10 = vadd.f32 %v1765_v11, %v730_v0  ;;  %v716_v3 = vmul.f32 %v1146_v2, %v1708_v6  ;;  %1155 = vrsqrt.f32 %v689_v1 }
 0x2db   : > { %v672_v13 = vmul.f32 0.0078125, %v655_v9  ;;  %777 = vst [vmem:[%s1772_s26 + $0x58] sm:$0xff] %v761_v7  ;;  %v733_v14 = vmul.f32 %v1759_v4, %v711_v8  ;;  %1157 = vrsqrt.f32 %v680_v5 }
 0x2dc   : > { %v1148_v15 = vpop.eup %1147  ;;  %768 = vst [vmem:[%s1772_s26 + $0x10] sm:$0xff] %v752_v10  ;;  %v738_v17 = vmul.f32 %v1759_v4, %v716_v3 }
 0x2dd   : > { %v688_v18 = vadd.f32 1e-05, %v672_v13  ;;  %v1150_v12 = vpop.eup %1149  ;;  %v755_v19 = vadd.f32 %v1765_v11, %v733_v14  ;;  %v719_v22 = vmul.f32 %v1148_v15, %v1725_v20 }
 0x2de   : > { %v760_v6 = vadd.f32 %v1765_v11, %v738_v17  ;;  %v710_v45 = vmul.f32 %v1150_v12, %v1720_v16 }
 0x2df   : > { %1159 = vrsqrt.f32 %v688_v18  ;;  %771 = vst [vmem:[%s1772_s26 + $0x28] sm:$0xff] %v755_v19  ;;  %v741_v23 = vmul.f32 %v1759_v4, %v719_v22 }
 0x2e0   : > { %v1152_v25 = vpop.eup %1151  ;;  %776 = vst [vmem:[%s1772_s26 + $0x50] sm:$0xff] %v760_v6  ;;  %v732_v26 = vmul.f32 %v1759_v4, %v710_v45 }
 0x2e1   : > { %v1154_v24 = vpop.eup %1153  ;;  %v763_v28 = vadd.f32 %v1765_v11, %v741_v23  ;;  %v713_v27 = vmul.f32 %v1152_v25, %v1735_v29 }
 0x2e2   : > { %v754_v20 = vadd.f32 %v1765_v11, %v732_v26  ;;  %v718_v31 = vmul.f32 %v1154_v24, %v1728_v21 }
 0x2e3   : > { %779 = vst [vmem:[%s1772_s26 + $0x68] sm:$0xff] %v763_v28  ;;  %v735_v16 = vmul.f32 %v1759_v4, %v713_v27 }
 0x2e4   : > { %v1156_v30 = vpop.eup %1155  ;;  %770 = vst [vmem:[%s1772_s26 + $0x20] sm:$0xff] %v754_v20  ;;  %v740_v33 = vmul.f32 %v1759_v4, %v718_v31 }
 0x2e5   : > { %v1158_v34 = vpop.eup %1157  ;;  %v757_v48 = vadd.f32 %v1765_v11, %v735_v16  ;;  %v721_v29 = vmul.f32 %v1156_v30, %v1745_v38 }
 0x2e6   : > { %v762_v37 = vadd.f32 %v1765_v11, %v740_v33  ;;  %v712_v21 = vmul.f32 %v1158_v34, %v1740_v32 }
 0x2e7   : > { %773 = vst [vmem:[%s1772_s26 + $0x38] sm:$0xff] %v757_v48  ;;  %v743_v54 = vmul.f32 %v1759_v4, %v721_v29 }
 0x2e8   : > { %778 = vst [vmem:[%s1772_s26 + $0x60] sm:$0xff] %v762_v37  ;;  %v734_v36 = vmul.f32 %v1759_v4, %v712_v21 }
 0x2e9   : > { %v1160_v42 = vpop.eup %1159  ;;  %v765_v40 = vadd.f32 %v1765_v11, %v743_v54 }
 0x2ea   : > { %v720_v43 = vmul.f32 %v1160_v42, %v1748_v35  ;;  %v756_v38 = vadd.f32 %v1765_v11, %v734_v36 }
 0x2eb   : > { %781 = vst [vmem:[%s1772_s26 + $0x78] sm:$0xff] %v765_v40 }
 0x2ec   : > { %v742_v32 = vmul.f32 %v1759_v4, %v720_v43  ;;  %772 = vst [vmem:[%s1772_s26 + $0x30] sm:$0xff] %v756_v38 }
 0x2ee   : > { %v764_v35 = vadd.f32 %v1765_v11, %v742_v32 }
 0x2f0   : > { %780 = vst [vmem:[%s1772_s26 + $0x70] sm:$0xff] %v764_v35 }
 0x2f1   : > { %1262 = shalt.err (!%p1259_p6)
}
 0x2f2   : > { %s1263_s29 = scalar_lea.hbm %s1836_s11, 2048  ;;  %s1267_s27 = scalar_lea.hbm %s1890_s6, 4096 }
 0x2f3   : > { %p1264_p8 = scmp.ne.s32.totalorder %s1836_s11, %s1263_s29  ;;  %p1268_p4 = scmp.lt.u32.totalorder %s1836_s11, %s1890_s6 }
 0x2f4   : > { %p1269_p11 = scmp.lt.u32.totalorder %s1267_s27, %s1263_s29  ;;  %p1271_p3 = scmp.lt.u32.totalorder %s1263_s29, %s1836_s11 }
 0x2f5   : > { %p1265_p10 = pnand %p1264_p8, %p1462_p12 }
 0x2f6   : > { %p1270_p13 = por %p1269_p11, %p1268_p4 }
 0x2f7   : > { %p1266_p0 = pneg %p1265_p10 }
 0x2f8   : > { %p1272_p7 = por %p1271_p3, %p1270_p13 }
 0x2fa   : > { %p1273_p9 = pnand %p1272_p7, %p1266_p0 }
 0x2fc   : > { %1276 = shalt.err (!%p1273_p9)
}
 0x2fd   : > { %s1331_s12 = smov 128   ;;  %s1332_s10 = smov 8  }
 0x2fe   : > { %1071 = dma.vmem_to_hbm [thread:$0]  (%p1462_p12), %s1838_s23, 2048, %s1836_s11, %s783_s25, %s1331_s12, %s1331_s12, %s1332_s10  }
 0x2ff PF: > { %s811_s8 = sand.u32 1, %s1311_s21   ;;  %p1921_p1 = scmp.ne.s32.totalorder %s1905_s28, 0 }
 0x300   : > { %p1922_p5 = scmp.ge.s32.totalorder %s1323_s24, 2  ;;  %s812_s26 = scalar_lea.sflag [#allocation4], %s811_s8 }
 0x302   : > { %p1085_p2 = pnand %p1922_p5, %p1921_p1 }
 0x304   : > { %1306 = dma.done.wait (!%p1085_p2), %s812_s26, 2048  }
 0x305   : > { %1308 = vsyncadd (!%p1085_p2), %s812_s26, 4294965248  ;;  %s1923_s24 = sld [smem:[#allocation14_spill]]  ;;  %s1924_s15 = sld [smem:[#allocation13_spill]] }
 0x306   : > { %s1925_s23 = sld [smem:[#allocation15_spill]]  ;;  %s1926_s21 = smov %s1315_s22 }
 0x30b   : > { %p22_p6 = scmp.ge.s32.totalorder %s1923_s24, 4   ;;  %s1927_s22 = smov %s1924_s15 }
 0x30d   :  { %24 = sbr.rel (!%p22_p6) target bundleno = 10 (0xa), region = 106 }
 0x314   :  { %817 = vsyncpa [#allocation3], 1 }
 0x315   :  { %819 = vsyncpa [#allocation3 + $0x1], 1 }
 0x316   :  { %820 = vsyncpa [#allocation6], 1 }
 0x317   :  { %822 = vsyncpa [#allocation6 + $0x1], 1 }
 0x318   :  { %823 = vsyncpa [#allocation4], 1 }
 0x319   :  { %825 = vsyncpa [#allocation4 + $0x1], 1 }

</bundles_post_ra>
